<compile_context>
chip_gen: v7x
topology: tpu7x:2x2x1
jax: 0.10.0
libtpu: 0.0.40
codegen_flags: <defaults>
</compile_context>

<pallas_src>
import math

import jax
import jax.numpy as jnp
from jax.experimental import pallas as pl
from jax.experimental.pallas import tpu as pltpu

_R_PAD = 128  # LoRA rank padded to one full lane group / MXU pass


def _round_up(x, m):
    return (x + m - 1) // m * m


def _dot_t(a, b):
    """a @ b.T with the transpose folded into dot_general; f32 accumulation."""
    return jax.lax.dot_general(a, b, (((1,), (1,)), ((), ())),
                               preferred_element_type=jnp.float32)


def _lora_linear_kernel(x_ref, w_ref, u_ref, b_ref, o_ref, acc_ref):
    # x_ref:   (tm, tk)      bf16  input row tile
    # w_ref:   (tn, tk)      bf16  base weight tile, native (out, in) layout
    # u_ref:   (tm, R_PAD)   bf16  precomputed LoRA intermediate x @ A^T
    # b_ref:   (tn, R_PAD)   bf16  LoRA B tile (scaling folded in), (out, r)
    # o_ref:   (tm, tn)
    # acc_ref: (tm, tn)      f32   base-path accumulator (resident across K)
    k = pl.program_id(2)

    @pl.when(k == 0)
    def _():
        acc_ref[...] = jnp.zeros_like(acc_ref)

    # Base path: x @ W^T accumulated over K tiles (bf16 MXU, f32 accumulate).
    acc_ref[...] += _dot_t(x_ref[...], w_ref[...])

    @pl.when(k == pl.num_programs(2) - 1)
    def _():
        # LoRA path: one rank-128 bf16 dot per output tile at finalize.
        lora = _dot_t(u_ref[...], b_ref[...])
        o_ref[...] = (acc_ref[...] + lora).astype(o_ref.dtype)


def prepare_lora_weights(weights, A, B, *, alpha=1.0, tn=512, tk=1024):
    """One-time weight preprocessing (hoist out of the forward path).

    weights: (out, in); A: (r, in); B: (out, r).
    Returns padded bf16 W / A and bf16 B with `alpha / r` folded in.
    """
    out_features, in_features = weights.shape
    lora_rank = A.shape[0]
    assert B.shape == (out_features, lora_rank)
    assert lora_rank <= _R_PAD
    scaling = float(alpha) / float(lora_rank)

    # Clamp tiles to the (padded) problem, keeping (8,128) / MXU alignment.
    tn = min(tn, _round_up(out_features, 128))
    tk = min(tk, _round_up(in_features, 128))
    Np = _round_up(out_features, tn)
    Kp = _round_up(in_features, tk)

    w_p = jnp.pad(weights.astype(jnp.bfloat16),
                  ((0, Np - out_features), (0, Kp - in_features)))
    a_p = jnp.pad(A.astype(jnp.bfloat16),
                  ((0, _R_PAD - lora_rank), (0, Kp - in_features)))
    b_p = jnp.pad((B * scaling).astype(jnp.bfloat16),
                  ((0, Np - out_features), (0, _R_PAD - lora_rank)))
    return dict(w=w_p, a=a_p, b=b_p,
                out_features=out_features, in_features=in_features,
                tn=tn, tk=tk)


def lora_linear_forward(x, params, *, tm=512, dropout_p=0.0,
                        vmem_limit_bytes=32 * 1024 * 1024):
    """LoRA linear forward using pre-prepared weights (see prepare_lora_weights)."""
    if dropout_p != 0.0:
        # TODO(synk): dropout on the LoRA path needs pltpu.prng_seed /
        # pltpu.prng_random_bits inside the kernel; module default is p=0.0.
        raise NotImplementedError("dropout_p > 0 is not supported")

    w_p, a_p, b_p = params["w"], params["a"], params["b"]
    out_features = params["out_features"]
    in_features = params["in_features"]
    tn, tk = params["tn"], params["tk"]
    Np, Kp = w_p.shape

    lead_shape = x.shape[:-1]
    M = math.prod(lead_shape) if lead_shape else 1
    out_dtype = x.dtype
    assert x.shape[-1] == in_features

    # bf16 packs 16 rows per sublane group.
    tm = min(tm, _round_up(M, 16))
    Mp = _round_up(M, tm)

    x2 = jnp.pad(x.reshape(M, in_features).astype(jnp.bfloat16),
                 ((0, Mp - M), (0, Kp - in_features)))

    # Precompute the LoRA intermediate u = x @ A^T once (f32 accumulation,
    # stored bf16).  Removes the cross-N dependency inside the kernel and
    # any A traffic from the pipelined grid.
    u = jax.lax.dot_general(x2, a_p, (((1,), (1,)), ((), ())),
                            preferred_element_type=jnp.float32
                            ).astype(jnp.bfloat16)

    grid = (Mp // tm, Np // tn, Kp // tk)

    cost = pl.CostEstimate(
        flops=int(2 * Mp * Np * Kp + 2 * Mp * Np * _R_PAD),
        transcendentals=0,
        bytes_accessed=int(x2.size * 2 + w_p.size * 2 + u.size * 2
                           + b_p.size * 2 + Mp * Np * out_dtype.itemsize))

    out_p = pl.pallas_call(
        _lora_linear_kernel,
        out_shape=jax.ShapeDtypeStruct((Mp, Np), out_dtype),
        grid_spec=pltpu.PrefetchScalarGridSpec(
            num_scalar_prefetch=0,
            grid=grid,
            in_specs=[
                pl.BlockSpec((tm, tk), lambda i, j, k: (i, k)),        # x
                pl.BlockSpec((tn, tk), lambda i, j, k: (j, k)),        # W (out,in)
                pl.BlockSpec((tm, _R_PAD), lambda i, j, k: (i, 0)),    # u = x @ A^T
                pl.BlockSpec((tn, _R_PAD), lambda i, j, k: (j, 0)),    # B*scaling
            ],
            out_specs=pl.BlockSpec((tm, tn), lambda i, j, k: (i, j)),
            scratch_shapes=[pltpu.VMEM((tm, tn), jnp.float32)]),
        compiler_params=pltpu.CompilerParams(
            # No cross-j dependency anymore: both i and j may shard across
            # TensorCores (v7x megacore); K stays the sequential reduction.
            dimension_semantics=("parallel", "parallel", "arbitrary"),
            # 32 MiB keeps the default 512/512/1024 tiling safe on v7x
            # (64 MiB physical); raise to 64-96 MiB on v5e/v6e with larger tiles.
            vmem_limit_bytes=vmem_limit_bytes),
        cost_estimate=cost,
    )(x2, w_p, u, b_p)

    out = out_p[:M, :out_features]
    return out.reshape(*lead_shape, out_features)


def lora_linear(x, weights, A, B, *, alpha=1.0, dropout_p=0.0,
                tm=512, tn=512, tk=1024):
    """Convenience one-shot API (prepares weights every call).

    For production, call prepare_lora_weights() once at model setup and
    lora_linear_forward() per forward pass.
    """
    params = prepare_lora_weights(weights, A, B, alpha=alpha, tn=tn, tk=tk)
    return lora_linear_forward(x, params, tm=tm, dropout_p=dropout_p)


def _reference(x, weights, A, B, alpha):
    """Pure-JAX reference on the same bf16-rounded operands (f32 accumulation)."""
    scaling = alpha / A.shape[0]
    hi = jax.lax.Precision.HIGHEST
    xb = x.astype(jnp.bfloat16).astype(jnp.float32)
    wb = weights.astype(jnp.bfloat16).astype(jnp.float32)
    ab = A.astype(jnp.bfloat16).astype(jnp.float32)
    bb = (scaling * B).astype(jnp.bfloat16).astype(jnp.float32)
    base = jnp.matmul(xb, wb.T, precision=hi)
    u = jnp.matmul(xb, ab.T, precision=hi).astype(jnp.bfloat16).astype(jnp.float32)
    lora = jnp.matmul(u, bb.T, precision=hi)
    return base + lora


if __name__ == "__main__":
    key = jax.random.PRNGKey(0)

    # 1) Small shapes consistent with the module (single-tile grid), using
    #    the hoisted prepare/apply path.
    batch, seq, in_f, out_f, r, alpha = 2, 8, 32, 32, 4, 1.0
    k_x, k_w, k_a, k_b, key = jax.random.split(key, 5)
    x = jax.random.normal(k_x, (batch, seq, in_f), dtype=jnp.float32)
    W = jax.random.normal(k_w, (out_f, in_f), dtype=jnp.float32)
    A = jax.random.normal(k_a, (r, in_f), dtype=jnp.float32) * 0.01
    B = jax.random.normal(k_b, (out_f, r), dtype=jnp.float32) * 0.01

    params = prepare_lora_weights(W, A, B, alpha=alpha)   # one-time setup
    out = jax.block_until_ready(lora_linear_forward(x, params))
    ref = _reference(x, W, A, B, alpha)
    assert out.shape == (batch, seq, out_f)
    assert jnp.allclose(out, ref, atol=1e-2, rtol=1e-2), "mismatch (small)"

    # 2) Multi-tile / ragged-M case exercising the 3-D grid, K accumulation
    #    and the LoRA finalize across several N tiles (M=272, K=384, N=256).
    batch, seq, in_f, out_f, r = 2, 136, 384, 256, 4
    k_x, k_w, k_a, k_b, key = jax.random.split(key, 5)
    x = jax.random.normal(k_x, (batch, seq, in_f), dtype=jnp.float32)
    W = jax.random.normal(k_w, (out_f, in_f), dtype=jnp.float32)
    A = jax.random.normal(k_a, (r, in_f), dtype=jnp.float32) * 0.01
    B = jax.random.normal(k_b, (out_f, r), dtype=jnp.float32) * 0.01

    params = prepare_lora_weights(W, A, B, alpha=alpha, tn=128, tk=128)
    out = jax.block_until_ready(lora_linear_forward(x, params, tm=128))
    ref = _reference(x, W, A, B, alpha)
    assert out.shape == (batch, seq, out_f)
    assert jnp.allclose(out, ref, atol=1e-2, rtol=1e-2), "mismatch (tiled)"

    # 3) Same shapes through the default (large) tile config — tiles clamp
    #    down to the problem size automatically.
    out = jax.block_until_ready(lora_linear(x, W, A, B, alpha=alpha))
    assert jnp.allclose(out, ref, atol=1e-2, rtol=1e-2), "mismatch (default tiles)"

    print("KERNEL_OK")
</pallas_src>

<mosaic_0001>
module attributes {stable_mosaic.version = 11 : i64} {
  func.func @_lora_linear_kernel(%arg0: i32, %arg1: i32, %arg2: i32, %arg3: memref<16x128xbf16, #tpu.memory_space<vmem>>, %arg4: memref<128x128xbf16, #tpu.memory_space<vmem>>, %arg5: memref<16x128xbf16, #tpu.memory_space<vmem>>, %arg6: memref<128x128xbf16, #tpu.memory_space<vmem>>, %arg7: memref<16x128xf32, #tpu.memory_space<vmem>>, %arg8: memref<16x128xf32, #tpu.memory_space<vmem>>) attributes {dimension_semantics = [#tpu.dimension_semantics<parallel>, #tpu.dimension_semantics<parallel>, #tpu.dimension_semantics<arbitrary>], iteration_bounds = array<i64: 1, 1, 1>, scalar_prefetch = 0 : i64, scratch_operands = 1 : i64, tpu.core_type = #tpu.core_type<tc>, window_params = [{transform_indices = @transform_0, window_bounds = array<i64: 16, 128>}, {transform_indices = @transform_1, window_bounds = array<i64: 128, 128>}, {transform_indices = @transform_2, window_bounds = array<i64: 16, 128>}, {transform_indices = @transform_3, window_bounds = array<i64: 128, 128>}, {transform_indices = @transform_4, window_bounds = array<i64: 16, 128>}]} {
    %c0_i32 = arith.constant 0 : i32
    %0 = arith.cmpi eq, %arg2, %c0_i32 : i32
    %1 = arith.extui %0 : i1 to i32
    %c0_i32_0 = arith.constant 0 : i32
    %2 = arith.cmpi ne, %1, %c0_i32_0 : i32
    scf.if %2 {
      %cst_10 = arith.constant 0.000000e+00 : f32
      %12 = vector.broadcast %cst_10 : f32 to vector<16x128xf32>
      %c0_11 = arith.constant 0 : index
      %c0_12 = arith.constant 0 : index
      %13 = vector.load %arg8[%c0_11, %c0_12] : memref<16x128xf32, #tpu.memory_space<vmem>>, vector<16x128xf32>
      tpu.vector_store %arg8[%c0_11, %c0_12], %12 {strides = array<i32>} : memref<16x128xf32, #tpu.memory_space<vmem>>, vector<16x128xf32>,
    } else {
    }
    %c0 = arith.constant 0 : index
    %c0_1 = arith.constant 0 : index
    %3 = vector.load %arg8[%c0, %c0_1] : memref<16x128xf32, #tpu.memory_space<vmem>>, vector<16x128xf32>
    %c0_2 = arith.constant 0 : index
    %c0_3 = arith.constant 0 : index
    %4 = vector.load %arg3[%c0_2, %c0_3] : memref<16x128xbf16, #tpu.memory_space<vmem>>, vector<16x128xbf16>
    %c0_4 = arith.constant 0 : index
    %c0_5 = arith.constant 0 : index
    %5 = vector.load %arg4[%c0_4, %c0_5] : memref<128x128xbf16, #tpu.memory_space<vmem>>, vector<128x128xbf16>
    %cst = arith.constant dense<0.000000e+00> : vector<16x128xf32>
    %6 = tpu.matmul %4, %5, %cst {dimension_numbers = #tpu.dot_dimension_numbers<[1], [1], [0], [0], [0, 0, 1, 0], [], []>} : vector<16x128xbf16>, vector<128x128xbf16>, vector<16x128xf32> -> vector<16x128xf32>
    %7 = arith.addf %3, %6 : vector<16x128xf32>
    %c0_6 = arith.constant 0 : index
    %c0_7 = arith.constant 0 : index
    %8 = vector.load %arg8[%c0_6, %c0_7] : memref<16x128xf32, #tpu.memory_space<vmem>>, vector<16x128xf32>
    tpu.vector_store %arg8[%c0_6, %c0_7], %7 {strides = array<i32>} : memref<16x128xf32, #tpu.memory_space<vmem>>, vector<16x128xf32>,
    %c0_i32_8 = arith.constant 0 : i32
    %9 = arith.cmpi eq, %arg2, %c0_i32_8 : i32
    %10 = arith.extui %9 : i1 to i32
    %c0_i32_9 = arith.constant 0 : i32
    %11 = arith.cmpi ne, %10, %c0_i32_9 : i32
    scf.if %11 {
      %c0_10 = arith.constant 0 : index
      %c0_11 = arith.constant 0 : index
      %12 = vector.load %arg5[%c0_10, %c0_11] : memref<16x128xbf16, #tpu.memory_space<vmem>>, vector<16x128xbf16>
      %c0_12 = arith.constant 0 : index
      %c0_13 = arith.constant 0 : index
      %13 = vector.load %arg6[%c0_12, %c0_13] : memref<128x128xbf16, #tpu.memory_space<vmem>>, vector<128x128xbf16>
      %cst_14 = arith.constant dense<0.000000e+00> : vector<16x128xf32>
      %14 = tpu.matmul %12, %13, %cst_14 {dimension_numbers = #tpu.dot_dimension_numbers<[1], [1], [0], [0], [0, 0, 1, 0], [], []>} : vector<16x128xbf16>, vector<128x128xbf16>, vector<16x128xf32> -> vector<16x128xf32>
      %c0_15 = arith.constant 0 : index
      %c0_16 = arith.constant 0 : index
      %15 = vector.load %arg8[%c0_15, %c0_16] : memref<16x128xf32, #tpu.memory_space<vmem>>, vector<16x128xf32>
      %16 = arith.addf %15, %14 : vector<16x128xf32>
      %c0_17 = arith.constant 0 : index
      %c0_18 = arith.constant 0 : index
      %17 = vector.load %arg7[%c0_17, %c0_18] : memref<16x128xf32, #tpu.memory_space<vmem>>, vector<16x128xf32>
      tpu.vector_store %arg7[%c0_17, %c0_18], %16 {strides = array<i32>} : memref<16x128xf32, #tpu.memory_space<vmem>>, vector<16x128xf32>,
    } else {
    }
    return
  }
  func.func @transform_0(%arg0: i32, %arg1: i32, %arg2: i32) -> (i32, i32) {
    %c0_i32 = arith.constant 0 : i32
    return %arg0, %arg2 : i32, i32
  }
  func.func @transform_1(%arg0: i32, %arg1: i32, %arg2: i32) -> (i32, i32) {
    %c0_i32 = arith.constant 0 : i32
    return %arg1, %arg2 : i32, i32
  }
  func.func @transform_2(%arg0: i32, %arg1: i32, %arg2: i32) -> (i32, i32) {
    %c0_i32 = arith.constant 0 : i32
    %c0_i32_0 = arith.constant 0 : i32
    return %arg0, %c0_i32 : i32, i32
  }
  func.func @transform_3(%arg0: i32, %arg1: i32, %arg2: i32) -> (i32, i32) {
    %c0_i32 = arith.constant 0 : i32
    %c0_i32_0 = arith.constant 0 : i32
    return %arg1, %c0_i32 : i32, i32
  }
  func.func @transform_4(%arg0: i32, %arg1: i32, %arg2: i32) -> (i32, i32) {
    %c0_i32 = arith.constant 0 : i32
    return %arg0, %arg1 : i32, i32
  }
}

</mosaic_0001>

<bundles_post_ra>
// kernel: tpu_custom_call.1
= control target key start
LH: loop header
LB: loop body
LE: loop exit
PB: predicated region body
PF: predicated region fallthrough
CT: control target
= control target key end

     0   :  { %9 = vsyncpa [#allocation4], 0  ;;  %s687_s0 = inlined_call_operand.hbm [shape: bf16[16,128], index: 0, kind: input, shape index: {}]   ;;  %s688_s1 = inlined_call_operand.hbm [shape: bf16[128,128], index: 1, kind: input, shape index: {}]   ;;  %s689_s2 = inlined_call_operand.hbm [shape: bf16[16,128], index: 2, kind: input, shape index: {}]   ;;  %s690_s3 = inlined_call_operand.hbm [shape: bf16[128,128], index: 3, kind: input, shape index: {}]   ;;  %s691_s4 = inlined_call_operand.hbm [shape: f32[16,128], index: 4, kind: output, shape index: {}]  }
   0x1   :  { %10 = vsyncpa [#allocation7], 0 }
   0x2   :  { %11 = vsyncpa [#allocation10], 0 }
   0x3   :  { %12 = vsyncpa [#allocation5], 0  ;;  %s565_s15 = smov [#allocation6]   ;;  %s566_s17 = smov [#allocation3]  }
   0x4   :  { %s30_s16 = sshll.u32 %s565_s15, 4  ;;  %s18_s18 = sshll.u32 %s566_s17, 4  ;;  %s31_s16 = int_to_ptr.vmem [resolvable:$true] %s30_s16  ;;  %s601_s18 = int_to_ptr.vmem [resolvable:$true] %s18_s18 }
   0x5   :  { %s447_s21 = scalar_lea.hbm %s688_s1, 1024 }
   0x6   :  { %p448_p0 = scmp.ne.s32.totalorder %s688_s1, %s447_s21  ;;  %p451_p1 = scmp.lt.u32.totalorder %s447_s21, %s688_s1 }
   0x8   :  { %p453_p2 = pnand %p451_p1, %p448_p0 }
   0xa   :  { %456 = shalt.err (!%p453_p2)
}
   0xb   :  { %s457_s26 = scalar_lea.vmem %s31_s16, 1024  ;;  %p462_p4 = scmp.lt.s32.totalorder %s31_s16, %s31_s16 }
   0xc   :  { %p458_p3 = scmp.ne.s32.totalorder %s31_s16, %s457_s26  ;;  %p463_p5 = scmp.lt.s32.totalorder %s457_s26, %s457_s26 }
   0xe   :  { %p464_p6 = por %p463_p5, %p462_p4 }
  0x10   :  { %p465_p7 = pnand %p464_p6, %p458_p3 }
  0x12   :  { %468 = shalt.err (!%p465_p7)
}
  0x13   :  { %s567_s27 = smov 64   ;;  %s568_s28 = smov 4  }
  0x14   :  { %36 = dma.hbm_to_vmem [thread:$0]  %s688_s1, 1024, %s31_s16, [#allocation7], %s567_s27, %s567_s27, %s568_s28  }
  0x15   :  { %s469_s7 = scalar_lea.hbm %s687_s0, 128 }
  0x16   :  { %p470_p8 = scmp.ne.s32.totalorder %s687_s0, %s469_s7  ;;  %p473_p9 = scmp.lt.u32.totalorder %s469_s7, %s687_s0 }
  0x18   :  { %p475_p10 = pnand %p473_p9, %p470_p8 }
  0x1a   :  { %478 = shalt.err (!%p475_p10)
}
  0x1b   :  { %s479_s12 = scalar_lea.vmem %s601_s18, 128  ;;  %p484_p12 = scmp.lt.s32.totalorder %s601_s18, %s601_s18 }
  0x1c   :  { %p480_p11 = scmp.ne.s32.totalorder %s601_s18, %s479_s12  ;;  %p485_p13 = scmp.lt.s32.totalorder %s479_s12, %s479_s12 }
  0x1e   :  { %p486_p0 = por %p485_p13, %p484_p12 }
  0x20   :  { %p487_p1 = pnand %p486_p0, %p480_p11 }
  0x22   :  { %490 = shalt.err (!%p487_p1)
}
  0x23   :  { %24 = dma.hbm_to_vmem [thread:$0]  %s687_s0, 128, %s601_s18, [#allocation4], %s567_s27, %s567_s27, %s568_s28  }
  0x24   :  { %s569_s14 = smov [#allocation8]   ;;  %s570_s16 = smov [#allocation9]  }
  0x25   :  { %s42_s15 = sshll.u32 %s569_s14, 4  ;;  %s54_s17 = sshll.u32 %s570_s16, 4  ;;  %s43_s15 = int_to_ptr.vmem [resolvable:$true] %s42_s15  ;;  %s638_s17 = int_to_ptr.vmem [resolvable:$true] %s54_s17 }
  0x26   :  { %s491_s21 = scalar_lea.hbm %s689_s2, 128 }
  0x27   :  { %p492_p2 = scmp.ne.s32.totalorder %s689_s2, %s491_s21  ;;  %p495_p3 = scmp.lt.u32.totalorder %s491_s21, %s689_s2 }
  0x29   :  { %p497_p4 = pnand %p495_p3, %p492_p2 }
  0x2b   :  { %500 = shalt.err (!%p497_p4)
}
  0x2c   :  { %s501_s0 = scalar_lea.vmem %s43_s15, 128  ;;  %p506_p6 = scmp.lt.s32.totalorder %s43_s15, %s43_s15 }
  0x2d   :  { %p502_p5 = scmp.ne.s32.totalorder %s43_s15, %s501_s0  ;;  %p507_p7 = scmp.lt.s32.totalorder %s501_s0, %s501_s0 }
  0x2f   :  { %p508_p8 = por %p507_p7, %p506_p6 }
  0x31   :  { %p509_p9 = pnand %p508_p8, %p502_p5 }
  0x33   :  { %512 = shalt.err (!%p509_p9)
}
  0x34   :  { %48 = dma.hbm_to_vmem [thread:$0]  %s689_s2, 128, %s43_s15, [#allocation7], %s567_s27, %s567_s27, %s568_s28  }
  0x35   :  { %s513_s5 = scalar_lea.hbm %s690_s3, 1024 }
  0x36   :  { %p514_p10 = scmp.ne.s32.totalorder %s690_s3, %s513_s5  ;;  %p517_p11 = scmp.lt.u32.totalorder %s513_s5, %s690_s3 }
  0x38   :  { %p519_p12 = pnand %p517_p11, %p514_p10 }
  0x3a   :  { %522 = shalt.err (!%p519_p12)
}
  0x3b   :  { %s523_s10 = scalar_lea.vmem %s638_s17, 1024  ;;  %p528_p0 = scmp.lt.s32.totalorder %s638_s17, %s638_s17 }
  0x3c   :  { %p524_p13 = scmp.ne.s32.totalorder %s638_s17, %s523_s10  ;;  %p529_p1 = scmp.lt.s32.totalorder %s523_s10, %s523_s10 }
  0x3e   :  { %p530_p2 = por %p529_p1, %p528_p0 }
  0x40   :  { %p531_p3 = pnand %p530_p2, %p524_p13 }
  0x42   :  { %534 = shalt.err (!%p531_p3)
}
  0x43   :  { %60 = dma.hbm_to_vmem [thread:$0]  %s690_s3, 1024, %s638_s17, [#allocation10], %s567_s27, %s567_s27, %s568_s28  }
  0x44   :  { %557 = dma.done.wait [#allocation4], 128  }
  0x45   :  { %558 = vsyncadd [#allocation4], 4294967168 }
  0x46   :  { %559 = dma.done.wait [#allocation7], 1152  }
  0x47   :  { %560 = vsyncadd [#allocation7], 4294966144 }
  0x48   :  { %561 = dma.done.wait [#allocation10], 1024  }
  0x49   :  { %562 = vsyncadd [#allocation10], 4294966272  ;;  %v571_v0 = vmov 0.0   ;;  %vm572_vm0 = vmmov 0   ;;  %v429_v1 = vld [vmem:[#allocation6] sm:$0xff]   ;;  %v430_v2 = vld [vmem:[#allocation9] sm:$0xff]  }
  0x4a   :  { %376 = vmatprep.subr.bf16.mxu1 %v571_v0  ;;  %396 = vmatprep.subr.bf16.mxu0 %v571_v0  ;;  %v431_v3 = vld [vmem:[#allocation6 + $0x8] sm:$0xff]   ;;  %v432_v4 = vld [vmem:[#allocation9 + $0x8] sm:$0xff]   ;;  %v434_v6 = vld [vmem:[#allocation9 + $0x10] sm:$0xff]   ;;  %s573_s3 = smov [#allocation11]  }
  0x4b   :  { %392 = vmatprep.mubr.msk.bf16.mxu1 %vm572_vm0, %v571_v0  ;;  %412 = vmatprep.mubr.msk.bf16.mxu0 %vm572_vm0, %v571_v0  ;;  %v433_v5 = vld [vmem:[#allocation6 + $0x10] sm:$0xff]   ;;  %v435_v7 = vld [vmem:[#allocation6 + $0x18] sm:$0xff]   ;;  %v436_v8 = vld [vmem:[#allocation9 + $0x18] sm:$0xff]   ;;  %s326_s27 = sshll.u32 %s573_s3, 4  ;;  %s327_s27 = int_to_ptr.vmem [resolvable:$true] %s326_s27 }
  0x4c   :  { %377 = vmatpush3.bf16.xpose.msra.mxu1 %v429_v1  ;;  %397 = vmatpush3.bf16.xpose.msra.mxu0 %v430_v2  ;;  %v437_v9 = vld [vmem:[#allocation6 + $0x20] sm:$0xff]   ;;  %v438_v10 = vld [vmem:[#allocation9 + $0x20] sm:$0xff]   ;;  %v440_v12 = vld [vmem:[#allocation9 + $0x28] sm:$0xff]   ;;  %s535_s28 = scalar_lea.vmem %s327_s27, 256  ;;  %p540_p5 = scmp.lt.s32.totalorder %s327_s27, %s327_s27 }
  0x4d   :  { %378 = vmatprep.subr.bf16.mxu1 %v571_v0  ;;  %398 = vmatprep.subr.bf16.mxu0 %v571_v0  ;;  %v439_v11 = vld [vmem:[#allocation6 + $0x28] sm:$0xff]   ;;  %v441_v13 = vld [vmem:[#allocation6 + $0x30] sm:$0xff]   ;;  %v442_v14 = vld [vmem:[#allocation9 + $0x30] sm:$0xff]   ;;  %p536_p4 = scmp.ne.s32.totalorder %s327_s27, %s535_s28  ;;  %p541_p6 = scmp.lt.s32.totalorder %s535_s28, %s535_s28 }
  0x4e   :  { %v443_v15 = vld [vmem:[#allocation6 + $0x38] sm:$0xff]   ;;  %v444_v16 = vld [vmem:[#allocation9 + $0x38] sm:$0xff]  }
  0x4f   :  { %v445_v17 = vld [vmem:[#allocation3] sm:$0xff]   ;;  %v446_v18 = vld [vmem:[#allocation8] sm:$0xff]   ;;  %p542_p7 = por %p541_p6, %p540_p5 }
  0x51   :  { %p543_p8 = pnand %p542_p7, %p536_p4 }
  0x54   :  { %379 = vmatpush3.bf16.xpose.msra.mxu1 %v431_v3  ;;  %399 = vmatpush3.bf16.xpose.msra.mxu0 %v432_v4 }
  0x55   :  { %380 = vmatprep.subr.bf16.mxu1 %v571_v0  ;;  %400 = vmatprep.subr.bf16.mxu0 %v571_v0 }
  0x5c   :  { %381 = vmatpush3.bf16.xpose.msra.mxu1 %v433_v5  ;;  %401 = vmatpush3.bf16.xpose.msra.mxu0 %v434_v6 }
  0x5d   :  { %382 = vmatprep.subr.bf16.mxu1 %v571_v0  ;;  %402 = vmatprep.subr.bf16.mxu0 %v571_v0 }
  0x64   :  { %383 = vmatpush3.bf16.xpose.msra.mxu1 %v435_v7  ;;  %403 = vmatpush3.bf16.xpose.msra.mxu0 %v436_v8 }
  0x65   :  { %384 = vmatprep.subr.bf16.mxu1 %v571_v0  ;;  %404 = vmatprep.subr.bf16.mxu0 %v571_v0 }
  0x6c   :  { %385 = vmatpush3.bf16.xpose.msra.mxu1 %v437_v9  ;;  %405 = vmatpush3.bf16.xpose.msra.mxu0 %v438_v10 }
  0x6d   :  { %386 = vmatprep.subr.bf16.mxu1 %v571_v0  ;;  %406 = vmatprep.subr.bf16.mxu0 %v571_v0 }
  0x74   :  { %387 = vmatpush3.bf16.xpose.msra.mxu1 %v439_v11  ;;  %407 = vmatpush3.bf16.xpose.msra.mxu0 %v440_v12 }
  0x75   :  { %388 = vmatprep.subr.bf16.mxu1 %v571_v0  ;;  %408 = vmatprep.subr.bf16.mxu0 %v571_v0 }
  0x7c   :  { %389 = vmatpush3.bf16.xpose.msra.mxu1 %v441_v13  ;;  %409 = vmatpush3.bf16.xpose.msra.mxu0 %v442_v14 }
  0x7d   :  { %390 = vmatprep.subr.bf16.mxu1 %v571_v0  ;;  %410 = vmatprep.subr.bf16.mxu0 %v571_v0 }
  0x84   :  { %391 = vmatpush3.bf16.xpose.msra.mxu1 %v443_v15  ;;  %411 = vmatpush3.bf16.xpose.msra.mxu0 %v444_v16 }
  0x8b   :  { %393 = vmatmul.mubr.bf16.vlgmr.msra.gmra.mrb[0].mxu1 %v445_v17  ;;  %413 = vmatmul.mubr.bf16.vlgmr.msra.gmra.mrb[0].mxu0 %v446_v18 }
 0x15e   :  { %v188_v19 = vpop.f32.mrb[0].mxu1  ;;  %v308_v20 = vpop.f32.mrb[0].mxu0 }
 0x15f   :  { %v394_v21 = vpop.f32.mrb[1].mxu1  ;;  %v317_v22 = vadd.f32 %v308_v20, %v188_v19  ;;  %v414_v23 = vpop.f32.mrb[1].mxu0 }
 0x160   :  { %v191_v24 = vpop.f32.mrb[2].mxu1  ;;  %v311_v25 = vpop.f32.mrb[2].mxu0 }
 0x161   :  { %v395_v26 = vpop.f32.mrb[3].mxu1  ;;  %319 = vst [vmem:[#allocation11] sm:$0xff] %v317_v22  ;;  %v318_v27 = vadd.f32 %v311_v25, %v191_v24  ;;  %v415_v28 = vpop.f32.mrb[3].mxu0 }
 0x163   :  { %320 = vst [vmem:[#allocation11 + $0x8] sm:$0xff] %v318_v27 }
 0x164   :  { %546 = shalt.err (!%p543_p8)
}
 0x165   :  { %s547_s13 = scalar_lea.hbm %s691_s4, 256 }
 0x166   :  { %p548_p9 = scmp.ne.s32.totalorder %s691_s4, %s547_s13  ;;  %p551_p10 = scmp.lt.u32.totalorder %s547_s13, %s691_s4 }
 0x168   :  { %p553_p11 = pnand %p551_p10, %p548_p9 }
 0x16a   :  { %556 = shalt.err (!%p553_p11)
}
 0x16b   :  { %s574_s19 = smov 128   ;;  %s575_s20 = smov 8  }
 0x16c   :  { %332 = dma.vmem_to_hbm [thread:$0]  %s327_s27, 256, %s691_s4, [#allocation5], %s574_s19, %s574_s19, %s575_s20  }
 0x16d   :  { %563 = dma.done.wait [#allocation5], 256  }
 0x16e   :  { %564 = vsyncadd [#allocation5], 4294967040 }
 0x16f   :  { %336 = vsyncpa [#allocation4], 1 }
 0x170   :  { %337 = vsyncpa [#allocation7], 1 }
 0x171   :  { %338 = vsyncpa [#allocation10], 1 }
 0x172   :  { %339 = vsyncpa [#allocation5], 1 }

</bundles_post_ra>
